<compile_context>
chip_gen: v6e
topology: v6e:2x2x1
jax: 0.10.0
libtpu: 0.0.40
codegen_flags: <defaults>
</compile_context>

<pallas_src>
import jax
import jax.numpy as jnp
from jax.experimental import pallas as pl
from jax.experimental.pallas import tpu as pltpu


def _round_up(x, m):
    return (x + m - 1) // m * m


def _pad_to(x, target_shape):
    pads = [(0, t - s) for s, t in zip(x.shape, target_shape)]
    if all(p == (0, 0) for p in pads):
        return x
    return jnp.pad(x, pads)


def _pick_tb(B):
    """Batch tile: 128 rows for large batches (full MXU rows, fewest W
    re-streams); for mid-size batches guarantee >= 2 batch tiles so the
    'parallel' axis can shard across v7x's two TensorCores; tiny batches
    keep 16-row granularity."""
    if B <= 32:
        return 16
    if B >= 256:
        return 128
    return min(128, max(16, _round_up((B + 1) // 2, 16)))


def _vmem_tile_bytes(tb, tf, d_pad, k_pad):
    """Double-buffered img + W + resident text (bf16), double-buffered f32
    output, single f32 accumulator scratch."""
    return (2 * (tb * tf + tf * d_pad + d_pad * k_pad) * 2
            + 2 * tb * k_pad * 4
            + tb * d_pad * 4)


# Budget the tile working set for the smallest-VMEM generation (v7x: 64 MiB
# physical) with headroom; v5e/v6e (128 MiB) trivially satisfy it too.
_VMEM_TILE_BUDGET = 40 * 1024 * 1024
_VMEM_LIMIT_BYTES = 48 * 1024 * 1024


def _clip_forward_kernel(img_ref, w_ref, txt_t_ref, logits_ref, acc_ref):
    """CLIP image-scoring kernel, tiled over (batch, F-reduction).

    img_ref    : [TB, TF]   bf16 image tile                          (VMEM)
    w_ref      : [TF, Dp]   bf16 visual-projection weight tile       (VMEM)
    txt_t_ref  : [Dp, Kp]   bf16 pre-scaled, pre-normalized text^T   (VMEM, resident)
    logits_ref : [TB, Kp]   f32 output logits                        (VMEM)
    acc_ref    : [TB, Dp]   f32 image-feature accumulator            (VMEM scratch)
    """
    f_step = pl.program_id(1)

    @pl.when(f_step == 0)
    def _init():
        acc_ref[...] = jnp.zeros_like(acc_ref)

    # --- image encoder: bf16 operands on the MXU, f32 accumulation over F ---
    acc_ref[...] += jnp.dot(img_ref[...], w_ref[...],
                            preferred_element_type=jnp.float32)

    @pl.when(f_step == pl.num_programs(1) - 1)
    def _finalize():
        feats = acc_ref[...]                                      # [TB, Dp] f32
        # L2-normalize image features (matches x / x.norm(dim=-1, keepdim=True));
        # the 1e-12 clamp only protects exactly-zero (padded) rows, which are
        # sliced off in the wrapper.
        inv_norm = jax.lax.rsqrt(
            jnp.maximum(jnp.sum(feats * feats, axis=-1, keepdims=True), 1e-12))
        feats_n = (feats * inv_norm).astype(jnp.bfloat16)

        # logits = f_img_n @ (exp(logit_scale) * f_txt_n)^T ; the scale and the
        # text normalization were folded in once by the wrapper, so the
        # epilogue is matmul + store only.
        logits_ref[...] = jnp.dot(
            feats_n, txt_t_ref[...],
            preferred_element_type=jnp.float32).astype(logits_ref.dtype)


def clip_forward(image_nchw, w_visual, text_features, logit_scale,
                 *, tb=None, tf=None):
    """Wrapper: flatten NCHW image, pad to TPU-friendly shapes, invoke kernel."""
    B = image_nchw.shape[0]
    F, D = w_visual.shape
    K = text_features.shape[0]

    # Flatten row-major (== torch.flatten) and cast MXU operands to bf16;
    # f32 is kept only inside the kernel's accumulator.
    img = image_nchw.reshape(B, F).astype(jnp.bfloat16)
    w = w_visual.astype(jnp.bfloat16)

    # Text path: normalize + fold exp(logit_scale) + transpose ONCE, outside
    # the (B, F)-tiled image loop (no per-tile exp / scale multiply in-kernel).
    txt = text_features.astype(jnp.float32)
    scale = jnp.exp(logit_scale.astype(jnp.float32))
    txt = txt * (scale * jax.lax.rsqrt(
        jnp.sum(txt * txt, axis=-1, keepdims=True)))
    txt_t = txt.T.astype(jnp.bfloat16)                            # [D, K]

    # ---- tile sizing -------------------------------------------------------
    if tb is None:
        tb = _pick_tb(B)
    tb = max(8, _round_up(tb, 8))
    if tf is None:
        tf = min(2048, _round_up(F, 256))
    tf = max(128, _round_up(tf, 128))

    D_pad = _round_up(D, 128)
    K_pad = _round_up(K, 128)

    # Shrink TF (then TB) until the double-buffered working set fits the
    # per-generation-safe VMEM budget.
    while _vmem_tile_bytes(tb, tf, D_pad, K_pad) > _VMEM_TILE_BUDGET and tf > 128:
        tf = max(128, tf // 2)
    while _vmem_tile_bytes(tb, tf, D_pad, K_pad) > _VMEM_TILE_BUDGET and tb > 8:
        tb = max(8, tb // 2)

    TB, TF = tb, tf
    B_pad = _round_up(B, TB)
    F_pad = _round_up(F, TF)

    img_p = _pad_to(img, (B_pad, F_pad))
    w_p = _pad_to(w, (F_pad, D_pad))
    txt_t_p = _pad_to(txt_t, (D_pad, K_pad))

    grid = (B_pad // TB, F_pad // TF)

    cost = pl.CostEstimate(
        flops=2 * B_pad * F_pad * D_pad + 2 * B_pad * D_pad * K_pad,
        transcendentals=0,
        bytes_accessed=(B_pad * F_pad * 2          # image (bf16)
                        + F_pad * D_pad * 2        # W (bf16, per-pass)
                        + D_pad * K_pad * 2        # text (bf16)
                        + B_pad * K_pad * 4))      # logits (f32)

    logits_p = pl.pallas_call(
        _clip_forward_kernel,
        out_shape=jax.ShapeDtypeStruct((B_pad, K_pad), jnp.float32),
        grid_spec=pltpu.PrefetchScalarGridSpec(
            num_scalar_prefetch=0,
            grid=grid,
            in_specs=[
                pl.BlockSpec((TB, TF), lambda b, f: (b, f)),        # image tile
                pl.BlockSpec((TF, D_pad), lambda b, f: (f, 0)),     # weight tile
                pl.BlockSpec((D_pad, K_pad), lambda b, f: (0, 0)),  # text (resident)
            ],
            out_specs=pl.BlockSpec((TB, K_pad), lambda b, f: (b, 0)),
            scratch_shapes=[pltpu.VMEM((TB, D_pad), jnp.float32)],
        ),
        compiler_params=pltpu.CompilerParams(
            dimension_semantics=("parallel", "arbitrary"),
            vmem_limit_bytes=_VMEM_LIMIT_BYTES,
        ),
        cost_estimate=cost,
    )(img_p, w_p, txt_t_p)

    return logits_p[:B, :K]


def clip_forward_ref(image_nchw, w_visual, text_features, logit_scale):
    """Plain-JAX reference mirroring the kernel's bf16-operand / f32-accum math
    (exp(logit_scale) folded into the bf16 text features, as in the kernel)."""
    B = image_nchw.shape[0]
    img = image_nchw.reshape(B, -1).astype(jnp.bfloat16)
    w = w_visual.astype(jnp.bfloat16)
    feats = jnp.dot(img, w, preferred_element_type=jnp.float32)
    feats = feats * jax.lax.rsqrt(
        jnp.maximum(jnp.sum(feats * feats, axis=-1, keepdims=True), 1e-12))
    txt = text_features.astype(jnp.float32)
    scale = jnp.exp(logit_scale.astype(jnp.float32))
    txt = txt * (scale * jax.lax.rsqrt(
        jnp.sum(txt * txt, axis=-1, keepdims=True)))
    return jnp.dot(feats.astype(jnp.bfloat16), txt.astype(jnp.bfloat16).T,
                   preferred_element_type=jnp.float32)


if __name__ == "__main__":
    # Small synthetic shapes consistent with the module's forward(image).
    B, C, H, W = 2, 4, 16, 16          # image batch, NCHW
    D = 32                             # CLIP embedding dim
    K = 8                              # number of classnames
    F = C * H * W                      # flattened image feature dim

    key = jax.random.PRNGKey(0)
    k_img, k_w, k_txt = jax.random.split(key, 3)

    image = jax.random.normal(k_img, (B, C, H, W), dtype=jnp.float32)
    w_visual = jax.random.normal(k_w, (F, D), dtype=jnp.float32) * 0.02
    text_features = jax.random.normal(k_txt, (K, D), dtype=jnp.float32)
    logit_scale = jnp.array(jnp.log(1.0 / 0.07), dtype=jnp.float32)  # CLIP init

    # Main small-shape run (single batch tile, single reduction step).
    logits = clip_forward(image, w_visual, text_features, logit_scale)
    logits = jax.block_until_ready(logits)
    ref = clip_forward_ref(image, w_visual, text_features, logit_scale)
    assert logits.shape == (B, K)
    assert jnp.allclose(logits, ref, atol=1e-2, rtol=1e-2)

    # Second run exercising multiple batch tiles, batch padding and the
    # multi-step F-reduction accumulator path.
    B2 = 40
    image2 = jax.random.normal(jax.random.PRNGKey(1), (B2, C, H, W),
                               dtype=jnp.float32)
    logits2 = clip_forward(image2, w_visual, text_features, logit_scale, tf=256)
    logits2 = jax.block_until_ready(logits2)
    ref2 = clip_forward_ref(image2, w_visual, text_features, logit_scale)
    assert logits2.shape == (B2, K)
    assert jnp.allclose(logits2, ref2, atol=1e-2, rtol=1e-2)

    print("KERNEL_OK")
</pallas_src>

<mosaic_0001>
module attributes {stable_mosaic.version = 11 : i64} {
  func.func @_clip_forward_kernel(%arg0: i32, %arg1: i32, %arg2: memref<16x1024xbf16, #tpu.memory_space<vmem>>, %arg3: memref<1024x128xbf16, #tpu.memory_space<vmem>>, %arg4: memref<128x128xbf16, #tpu.memory_space<vmem>>, %arg5: memref<16x128xf32, #tpu.memory_space<vmem>>, %arg6: memref<16x128xf32, #tpu.memory_space<vmem>>) attributes {dimension_semantics = [#tpu.dimension_semantics<parallel>, #tpu.dimension_semantics<arbitrary>], iteration_bounds = array<i64: 1, 1>, scalar_prefetch = 0 : i64, scratch_operands = 1 : i64, tpu.core_type = #tpu.core_type<tc>, window_params = [{transform_indices = @transform_0, window_bounds = array<i64: 16, 1024>}, {transform_indices = @transform_1, window_bounds = array<i64: 1024, 128>}, {pipeline_mode = #tpu.pipeline_mode<synchronous>, transform_indices = @transform_2, window_bounds = array<i64: 128, 128>}, {transform_indices = @transform_3, window_bounds = array<i64: 16, 128>}]} {
    %c0_i32 = arith.constant 0 : i32
    %0 = arith.cmpi eq, %arg1, %c0_i32 : i32
    %1 = arith.extui %0 : i1 to i32
    %c0_i32_0 = arith.constant 0 : i32
    %2 = arith.cmpi ne, %1, %c0_i32_0 : i32
    scf.if %2 {
      %cst_10 = arith.constant 0.000000e+00 : f32
      %12 = vector.broadcast %cst_10 : f32 to vector<16x128xf32>
      %c0_11 = arith.constant 0 : index
      %c0_12 = arith.constant 0 : index
      %13 = vector.load %arg6[%c0_11, %c0_12] : memref<16x128xf32, #tpu.memory_space<vmem>>, vector<16x128xf32>
      tpu.vector_store %arg6[%c0_11, %c0_12], %12 {strides = array<i32>} : memref<16x128xf32, #tpu.memory_space<vmem>>, vector<16x128xf32>,
    } else {
    }
    %c0 = arith.constant 0 : index
    %c0_1 = arith.constant 0 : index
    %3 = vector.load %arg6[%c0, %c0_1] : memref<16x128xf32, #tpu.memory_space<vmem>>, vector<16x128xf32>
    %c0_2 = arith.constant 0 : index
    %c0_3 = arith.constant 0 : index
    %4 = vector.load %arg2[%c0_2, %c0_3] : memref<16x1024xbf16, #tpu.memory_space<vmem>>, vector<16x1024xbf16>
    %c0_4 = arith.constant 0 : index
    %c0_5 = arith.constant 0 : index
    %5 = vector.load %arg3[%c0_4, %c0_5] : memref<1024x128xbf16, #tpu.memory_space<vmem>>, vector<1024x128xbf16>
    %cst = arith.constant dense<0.000000e+00> : vector<16x128xf32>
    %6 = tpu.matmul %4, %5, %cst {dimension_numbers = #tpu.dot_dimension_numbers<[1], [0], [0], [1], [0, 0, 1, 1], [], []>} : vector<16x1024xbf16>, vector<1024x128xbf16>, vector<16x128xf32> -> vector<16x128xf32>
    %7 = arith.addf %3, %6 : vector<16x128xf32>
    %c0_6 = arith.constant 0 : index
    %c0_7 = arith.constant 0 : index
    %8 = vector.load %arg6[%c0_6, %c0_7] : memref<16x128xf32, #tpu.memory_space<vmem>>, vector<16x128xf32>
    tpu.vector_store %arg6[%c0_6, %c0_7], %7 {strides = array<i32>} : memref<16x128xf32, #tpu.memory_space<vmem>>, vector<16x128xf32>,
    %c0_i32_8 = arith.constant 0 : i32
    %9 = arith.cmpi eq, %arg1, %c0_i32_8 : i32
    %10 = arith.extui %9 : i1 to i32
    %c0_i32_9 = arith.constant 0 : i32
    %11 = arith.cmpi ne, %10, %c0_i32_9 : i32
    scf.if %11 {
      %c0_10 = arith.constant 0 : index
      %c0_11 = arith.constant 0 : index
      %12 = vector.load %arg6[%c0_10, %c0_11] : memref<16x128xf32, #tpu.memory_space<vmem>>, vector<16x128xf32>
      %13 = arith.mulf %12, %12 : vector<16x128xf32>
      %cst_12 = arith.constant dense<0.000000e+00> : vector<16xf32>
      %14 = vector.multi_reduction <add>, %13, %cst_12 [1] : vector<16x128xf32> to vector<16xf32>
      %15 = vector.shape_cast %14 : vector<16xf32> to vector<16x1xf32>
      %cst_13 = arith.constant 9.99999996E-13 : f32
      %16 = vector.broadcast %cst_13 : f32 to vector<16x1xf32>
      %17 = arith.maximumf %15, %16 : vector<16x1xf32>
      %18 = math.rsqrt %17 : vector<16x1xf32>
      %19 = vector.broadcast %18 : vector<16x1xf32> to vector<16x128xf32>
      %20 = arith.mulf %12, %19 : vector<16x128xf32>
      %21 = arith.truncf %20 : vector<16x128xf32> to vector<16x128xbf16>
      %c0_14 = arith.constant 0 : index
      %c0_15 = arith.constant 0 : index
      %22 = vector.load %arg4[%c0_14, %c0_15] : memref<128x128xbf16, #tpu.memory_space<vmem>>, vector<128x128xbf16>
      %cst_16 = arith.constant dense<0.000000e+00> : vector<16x128xf32>
      %23 = tpu.matmul %21, %22, %cst_16 {dimension_numbers = #tpu.dot_dimension_numbers<[1], [0], [0], [1], [0, 0, 1, 1], [], []>} : vector<16x128xbf16>, vector<128x128xbf16>, vector<16x128xf32> -> vector<16x128xf32>
      %c0_17 = arith.constant 0 : index
      %c0_18 = arith.constant 0 : index
      %24 = vector.load %arg5[%c0_17, %c0_18] : memref<16x128xf32, #tpu.memory_space<vmem>>, vector<16x128xf32>
      tpu.vector_store %arg5[%c0_17, %c0_18], %23 {strides = array<i32>} : memref<16x128xf32, #tpu.memory_space<vmem>>, vector<16x128xf32>,
    } else {
    }
    return
  }
  func.func @transform_0(%arg0: i32, %arg1: i32) -> (i32, i32) {
    %c0_i32 = arith.constant 0 : i32
    return %arg0, %arg1 : i32, i32
  }
  func.func @transform_1(%arg0: i32, %arg1: i32) -> (i32, i32) {
    %c0_i32 = arith.constant 0 : i32
    %c0_i32_0 = arith.constant 0 : i32
    return %arg1, %c0_i32 : i32, i32
  }
  func.func @transform_2(%arg0: i32, %arg1: i32) -> (i32, i32) {
    %c0_i32 = arith.constant 0 : i32
    %c0_i32_0 = arith.constant 0 : i32
    %c0_i32_1 = arith.constant 0 : i32
    return %c0_i32, %c0_i32_0 : i32, i32
  }
  func.func @transform_3(%arg0: i32, %arg1: i32) -> (i32, i32) {
    %c0_i32 = arith.constant 0 : i32
    %c0_i32_0 = arith.constant 0 : i32
    return %arg0, %c0_i32 : i32, i32
  }
}

</mosaic_0001>

<bundles_post_ra>
// kernel: tpu_custom_call.1
= control target key start
LH: loop header
LB: loop body
LE: loop exit
PB: predicated region body
PF: predicated region fallthrough
CT: control target
= control target key end

     0   :  { %8 = vsyncpa [#allocation4], 0  ;;  %s1351_s0 = inlined_call_operand.hbm [shape: bf16[16,1024], index: 0, kind: input, shape index: {}]   ;;  %s1352_s1 = inlined_call_operand.hbm [shape: bf16[1024,128], index: 1, kind: input, shape index: {}]   ;;  %s1353_s2 = inlined_call_operand.hbm [shape: bf16[128,128], index: 2, kind: input, shape index: {}]   ;;  %s1354_s3 = inlined_call_operand.hbm [shape: f32[16,128], index: 3, kind: output, shape index: {}]  }
   0x1   :  { %9 = vsyncpa [#allocation7], 0 }
   0x2   :  { %10 = vsyncpa [#allocation5], 0  ;;  %s1307_s12 = smov [#allocation6]  }
   0x3   :  { %s28_s13 = sshll.u32 %s1307_s12, 4  ;;  %s29_s13 = int_to_ptr.vmem [resolvable:$true] %s28_s13 }
   0x4   :  { %s1229_s14 = scalar_lea.vmem %s29_s13, 8192  ;;  %p1234_p1 = scmp.lt.s32.totalorder %s29_s13, %s29_s13 }
   0x5   :  { %p1230_p0 = scmp.ne.s32.totalorder %s29_s13, %s1229_s14  ;;  %p1235_p2 = scmp.lt.s32.totalorder %s1229_s14, %s1229_s14 }
   0x7   :  { %p1236_p3 = por %p1235_p2, %p1234_p1 }
   0x9   :  { %p1237_p4 = pnand %p1236_p3, %p1230_p0 }
   0xb   :  { %1240 = shalt.err (!%p1237_p4)
}
   0xc   :  { %s1308_s15 = smov 64   ;;  %s1309_s16 = smov 4  }
   0xd   :  { %34 = dma.hbm_to_vmem [thread:$0]  %s1352_s1, 8192, %s29_s13, [#allocation7], %s1308_s15, %s1308_s15, %s1309_s16  }
   0xe   :  { %s1310_s19 = smov [#allocation3]  }
   0xf   :  { %s16_s20 = sshll.u32 %s1310_s19, 4  ;;  %s17_s20 = int_to_ptr.vmem [resolvable:$true] %s16_s20 }
  0x10   :  { %s1249_s21 = scalar_lea.vmem %s17_s20, 1024  ;;  %p1254_p6 = scmp.lt.s32.totalorder %s17_s20, %s17_s20 }
  0x11   :  { %p1250_p5 = scmp.ne.s32.totalorder %s17_s20, %s1249_s21  ;;  %p1255_p7 = scmp.lt.s32.totalorder %s1249_s21, %s1249_s21 }
  0x13   :  { %p1256_p8 = por %p1255_p7, %p1254_p6 }
  0x15   :  { %p1257_p9 = pnand %p1256_p8, %p1250_p5 }
  0x17   :  { %1260 = shalt.err (!%p1257_p9)
}
  0x18   :  { %s1311_s22 = smov 512   ;;  %s1312_s23 = smov 32  }
  0x19   :  { %22 = dma.hbm_to_vmem [thread:$0]  %s1351_s0, 1024, %s17_s20, [#allocation4], %s1311_s22, %s1311_s22, %s1312_s23  }
  0x1a   :  { %s1313_s26 = smov [#allocation8]  }
  0x1b   :  { %s40_s27 = sshll.u32 %s1313_s26, 4  ;;  %s41_s27 = int_to_ptr.vmem [resolvable:$true] %s40_s27 }
  0x1c   :  { %s1269_s1 = scalar_lea.vmem %s41_s27, 1024  ;;  %p1274_p11 = scmp.lt.s32.totalorder %s41_s27, %s41_s27 }
  0x1d   :  { %p1270_p10 = scmp.ne.s32.totalorder %s41_s27, %s1269_s1  ;;  %p1275_p12 = scmp.lt.s32.totalorder %s1269_s1, %s1269_s1 }
  0x1f   :  { %p1276_p13 = por %p1275_p12, %p1274_p11 }
  0x21   :  { %p1277_p0 = pnand %p1276_p13, %p1270_p10 }
  0x23   :  { %1280 = shalt.err (!%p1277_p0)
}
  0x24   :  { %46 = dma.hbm_to_vmem [thread:$0]  %s1353_s2, 1024, %s41_s27, [#allocation7], %s1308_s15, %s1308_s15, %s1309_s16  }
  0x25   :  { %1301 = dma.done.wait [#allocation4], 1024  }
  0x26   :  { %1302 = vsyncadd [#allocation4], 4294966272 }
  0x27   :  { %1303 = dma.done.wait [#allocation7], 9216  }
  0x28   :  { %1304 = vsyncadd [#allocation7], 4294958080  ;;  %v1145_v0 = vld [vmem:[#allocation6 + $0x78] sm:$0xff]   ;;  %v1149_v4 = vld [vmem:[#allocation6 + $0x70] sm:$0xff]   ;;  %vm1315_vm0 = vmmov 0   ;;  %s1316_s0 = smov [#allocation9]  }
  0x29   :  { %v1146_v1 = vld [vmem:[#allocation6 + $0xf8] sm:$0xff]   ;;  %1016 = vmatprep.subr.bf16.mxu0 %v1145_v0  ;;  %v1150_v5 = vld [vmem:[#allocation6 + $0xf0] sm:$0xff]   ;;  %v1153_v8 = vld [vmem:[#allocation6 + $0x68] sm:$0xff]   ;;  %s923_s2 = sshll.u32 %s1316_s0, 4  ;;  %s924_s2 = int_to_ptr.vmem [resolvable:$true] %s923_s2 }
  0x2a   :  { %v1147_v2 = vld [vmem:[#allocation6 + $0x38] sm:$0xff]   ;;  %1038 = vmatprep.subr.bf16.mxu1 %v1146_v1  ;;  %v1151_v6 = vld [vmem:[#allocation6 + $0x30] sm:$0xff]   ;;  %v1154_v9 = vld [vmem:[#allocation6 + $0xe8] sm:$0xff]   ;;  %s1281_s30 = scalar_lea.vmem %s924_s2, 256  ;;  %p1286_p2 = scmp.lt.s32.totalorder %s924_s2, %s924_s2 }
  0x2b   :  { %v1148_v3 = vld [vmem:[#allocation6 + $0xb8] sm:$0xff]   ;;  %1017 = vmatpush3.bf16.msra.mxu0 %v1147_v2  ;;  %v1152_v7 = vld [vmem:[#allocation6 + $0xb0] sm:$0xff]   ;;  %v1155_v10 = vld [vmem:[#allocation6 + $0x28] sm:$0xff]   ;;  %p1282_p1 = scmp.ne.s32.totalorder %s924_s2, %s1281_s30  ;;  %p1287_p3 = scmp.lt.s32.totalorder %s1281_s30, %s1281_s30 }
  0x2c   :  { %1039 = vmatpush3.bf16.msra.mxu1 %v1148_v3  ;;  %1018 = vmatprep.subr.bf16.mxu0 %v1149_v4  ;;  %v1156_v11 = vld [vmem:[#allocation6 + $0xa8] sm:$0xff]   ;;  %v1157_v12 = vld [vmem:[#allocation6 + $0x60] sm:$0xff]   ;;  %v1161_v16 = vld [vmem:[#allocation6 + $0x58] sm:$0xff]  }
  0x2d   :  { %1040 = vmatprep.subr.bf16.mxu1 %v1150_v5  ;;  %v1158_v13 = vld [vmem:[#allocation6 + $0xe0] sm:$0xff]   ;;  %v1162_v17 = vld [vmem:[#allocation6 + $0xd8] sm:$0xff]   ;;  %v1165_v20 = vld [vmem:[#allocation6 + $0x50] sm:$0xff]   ;;  %p1288_p4 = por %p1287_p3, %p1286_p2 }
  0x2e   :  { %v1159_v14 = vld [vmem:[#allocation6 + $0x20] sm:$0xff]   ;;  %v1163_v18 = vld [vmem:[#allocation6 + $0x18] sm:$0xff]   ;;  %v1166_v21 = vld [vmem:[#allocation6 + $0xd0] sm:$0xff]  }
  0x2f   :  { %1019 = vmatpush3.bf16.msra.mxu0 %v1151_v6  ;;  %v1160_v15 = vld [vmem:[#allocation6 + $0xa0] sm:$0xff]   ;;  %v1164_v19 = vld [vmem:[#allocation6 + $0x98] sm:$0xff]   ;;  %v1167_v22 = vld [vmem:[#allocation6 + $0x10] sm:$0xff]   ;;  %p1289_p5 = pnand %p1288_p4, %p1282_p1 }
  0x30   :  { %1041 = vmatpush3.bf16.msra.mxu1 %v1152_v7  ;;  %1020 = vmatprep.subr.bf16.mxu0 %v1153_v8  ;;  %v1168_v23 = vld [vmem:[#allocation6 + $0x90] sm:$0xff]   ;;  %v1169_v24 = vld [vmem:[#allocation6 + $0x48] sm:$0xff]   ;;  %v1173_v28 = vld [vmem:[#allocation6 + $0x40] sm:$0xff]  }
  0x31   :  { %1042 = vmatprep.subr.bf16.mxu1 %v1154_v9  ;;  %v1170_v25 = vld [vmem:[#allocation6 + $0xc8] sm:$0xff]   ;;  %v1174_v29 = vld [vmem:[#allocation6 + $0xc0] sm:$0xff]   ;;  %v1177_v40 = vld [vmem:[#allocation6 + $0x178] sm:$0xff]  }
  0x32   :  { %v1171_v26 = vld [vmem:[#allocation6 + $0x8] sm:$0xff]   ;;  %v1175_v30 = vld [vmem:[#allocation6] sm:$0xff]   ;;  %v1178_v41 = vld [vmem:[#allocation6 + $0x1f8] sm:$0xff]  }
  0x33   :  { %1021 = vmatpush3.bf16.msra.mxu0 %v1155_v10  ;;  %v1172_v27 = vld [vmem:[#allocation6 + $0x88] sm:$0xff]   ;;  %v1176_v31 = vld [vmem:[#allocation6 + $0x80] sm:$0xff]   ;;  %v1179_v42 = vld [vmem:[#allocation6 + $0x138] sm:$0xff]  }
  0x34   :  { %1043 = vmatpush3.bf16.msra.mxu1 %v1156_v11  ;;  %1022 = vmatprep.subr.bf16.mxu0 %v1157_v12  ;;  %v65_v32 = vld [vmem:[#allocation3] sm:$0xff]  ;;  %v66_v34 = vld [vmem:[#allocation3 + $0x8] sm:$0xff]  ;;  %v1180_v43 = vld [vmem:[#allocation6 + $0x1b8] sm:$0xff]  }
  0x35   :  { %1044 = vmatprep.subr.bf16.mxu1 %v1158_v13  ;;  %v69_v33 = vld [vmem:[#allocation3 + $0x20] sm:$0xff]  ;;  %v70_v37 = vld [vmem:[#allocation3 + $0x28] sm:$0xff]  ;;  %v1181_v44 = vld [vmem:[#allocation6 + $0x170] sm:$0xff]  }
  0x36   :  { %v936_v35 = vcombine.low %v65_v32, %v69_v33  ;;  %v937_v36 = vcombine.high %v65_v32, %v69_v33  ;;  %v938_v38 = vcombine.low %v66_v34, %v70_v37  ;;  %v939_v39 = vcombine.high %v66_v34, %v70_v37  ;;  %v1182_v45 = vld [vmem:[#allocation6 + $0x1f0] sm:$0xff]   ;;  %v1185_v48 = vld [vmem:[#allocation6 + $0x168] sm:$0xff]   ;;  %v1189_v52 = vld [vmem:[#allocation6 + $0x160] sm:$0xff]  }
  0x37   :  { %1023 = vmatpush3.bf16.msra.mxu0 %v1159_v14  ;;  %v1183_v46 = vld [vmem:[#allocation6 + $0x130] sm:$0xff]   ;;  %v1186_v49 = vld [vmem:[#allocation6 + $0x1e8] sm:$0xff]   ;;  %v1190_v53 = vld [vmem:[#allocation6 + $0x1e0] sm:$0xff]  }
  0x38   :  { %1045 = vmatpush3.bf16.msra.mxu1 %v1160_v15  ;;  %1024 = vmatprep.subr.bf16.mxu0 %v1161_v16  ;;  %v1184_v47 = vld [vmem:[#allocation6 + $0x1b0] sm:$0xff]   ;;  %v1187_v50 = vld [vmem:[#allocation6 + $0x128] sm:$0xff]   ;;  %v1191_v54 = vld [vmem:[#allocation6 + $0x120] sm:$0xff]  }
  0x39   :  { %1046 = vmatprep.subr.bf16.mxu1 %v1162_v17  ;;  %657 = vmatprep.mubr.bf16.mxu0 %v937_v36  ;;  %v1188_v51 = vld [vmem:[#allocation6 + $0x1a8] sm:$0xff]   ;;  %v1192_v55 = vld [vmem:[#allocation6 + $0x1a0] sm:$0xff]   ;;  %v1193_v56 = vld [vmem:[#allocation6 + $0x158] sm:$0xff]   ;;  %v1314_v17 = vmov 0.0  }
  0x3a   :  { %698 = vmatprep.mubr.bf16.mxu1 %v939_v39  ;;  %v1194_v57 = vld [vmem:[#allocation6 + $0x1d8] sm:$0xff]   ;;  %v1197_v60 = vld [vmem:[#allocation6 + $0x150] sm:$0xff]   ;;  %v1201_v0 = vld [vmem:[#allocation6 + $0x148] sm:$0xff]  }
  0x3b   :  { %1025 = vmatpush3.bf16.msra.mxu0 %v1163_v18  ;;  %v1195_v58 = vld [vmem:[#allocation6 + $0x118] sm:$0xff]   ;;  %v1198_v61 = vld [vmem:[#allocation6 + $0x1d0] sm:$0xff]   ;;  %v1202_v1 = vld [vmem:[#allocation6 + $0x1c8] sm:$0xff]  }
  0x3c   :  { %1047 = vmatpush3.bf16.msra.mxu1 %v1164_v19  ;;  %1026 = vmatprep.subr.bf16.mxu0 %v1165_v20  ;;  %v1196_v59 = vld [vmem:[#allocation6 + $0x198] sm:$0xff]   ;;  %v1199_v62 = vld [vmem:[#allocation6 + $0x110] sm:$0xff]   ;;  %v1203_v2 = vld [vmem:[#allocation6 + $0x108] sm:$0xff]  }
  0x3d   :  { %1048 = vmatprep.subr.bf16.mxu1 %v1166_v21  ;;  %v1200_v63 = vld [vmem:[#allocation6 + $0x190] sm:$0xff]   ;;  %v1204_v3 = vld [vmem:[#allocation6 + $0x188] sm:$0xff]   ;;  %v1205_v4 = vld [vmem:[#allocation6 + $0x140] sm:$0xff]  }
  0x3e   :  { %v1206_v5 = vld [vmem:[#allocation6 + $0x1c0] sm:$0xff]   ;;  %v67_v8 = vld [vmem:[#allocation3 + $0x10] sm:$0xff]  ;;  %v68_v12 = vld [vmem:[#allocation3 + $0x18] sm:$0xff] }
  0x3f   :  { %1027 = vmatpush3.bf16.msra.mxu0 %v1167_v22  ;;  %v1207_v6 = vld [vmem:[#allocation6 + $0x100] sm:$0xff]   ;;  %v71_v9 = vld [vmem:[#allocation3 + $0x30] sm:$0xff]  ;;  %v72_v13 = vld [vmem:[#allocation3 + $0x38] sm:$0xff] }
  0x40   :  { %1049 = vmatpush3.bf16.msra.mxu1 %v1168_v23  ;;  %1028 = vmatprep.subr.bf16.mxu0 %v1169_v24  ;;  %v1208_v7 = vld [vmem:[#allocation6 + $0x180] sm:$0xff]   ;;  %v940_v10 = vcombine.low %v67_v8, %v71_v9  ;;  %v941_v11 = vcombine.high %v67_v8, %v71_v9  ;;  %v942_v14 = vcombine.low %v68_v12, %v72_v13  ;;  %v1209_v16 = vld [vmem:[#allocation8 + $0x38] sm:$0xff]   ;;  %v1210_v18 = vld [vmem:[#allocation8 + $0x30] sm:$0xff]  }
  0x41   :  { %1050 = vmatprep.subr.bf16.mxu1 %v1170_v25  ;;  %v943_v15 = vcombine.high %v68_v12, %v72_v13 }
  0x43   :  { %1029 = vmatpush3.bf16.msra.mxu0 %v1171_v26 }
  0x44   :  { %1051 = vmatpush3.bf16.msra.mxu1 %v1172_v27  ;;  %1030 = vmatprep.subr.bf16.mxu0 %v1173_v28 }
  0x45   :  { %1052 = vmatprep.subr.bf16.mxu1 %v1174_v29 }
  0x47   :  { %1031 = vmatpush3.bf16.msra.mxu0 %v1175_v30 }
  0x48   :  { %1053 = vmatpush3.bf16.msra.mxu1 %v1176_v31  ;;  %1060 = vmatprep.subr.bf16.mxu0 %v1177_v40 }
  0x49   :  { %1082 = vmatprep.subr.bf16.mxu1 %v1178_v41 }
  0x4a   :  { %658 = vmatmul.mubr.bf16.vlgmr.msra.gmra.mxu0 %v936_v35 }
  0x4b   :  { %699 = vmatmul.mubr.bf16.vlgmr.msra.gmra.mxu1 %v938_v38  ;;  %1061 = vmatpush3.bf16.msra.mxu0 %v1179_v42 }
  0x4c   :  { %1083 = vmatpush3.bf16.msra.mxu1 %v1180_v43  ;;  %1062 = vmatprep.subr.bf16.mxu0 %v1181_v44 }
  0x4d   :  { %1084 = vmatprep.subr.bf16.mxu1 %v1182_v45  ;;  %739 = vmatprep.mubr.bf16.mxu0 %v941_v11 }
  0x4e   :  { %780 = vmatprep.mubr.bf16.mxu1 %v943_v15 }
  0x4f   :  { %1063 = vmatpush3.bf16.msra.mxu0 %v1183_v46 }
  0x50   :  { %1085 = vmatpush3.bf16.msra.mxu1 %v1184_v47  ;;  %1064 = vmatprep.subr.bf16.mxu0 %v1185_v48 }
  0x51   :  { %1086 = vmatprep.subr.bf16.mxu1 %v1186_v49 }
  0x53   :  { %1065 = vmatpush3.bf16.msra.mxu0 %v1187_v50 }
  0x54   :  { %1087 = vmatpush3.bf16.msra.mxu1 %v1188_v51  ;;  %1066 = vmatprep.subr.bf16.mxu0 %v1189_v52  ;;  %v1211_v51 = vld [vmem:[#allocation8 + $0x28] sm:$0xff]   ;;  %v1212_v52 = vld [vmem:[#allocation8 + $0x20] sm:$0xff]  }
  0x55   :  { %1088 = vmatprep.subr.bf16.mxu1 %v1190_v53  ;;  %v1213_v53 = vld [vmem:[#allocation8 + $0x18] sm:$0xff]  }
  0x57   :  { %1067 = vmatpush3.bf16.msra.mxu0 %v1191_v54  ;;  %v1214_v54 = vld [vmem:[#allocation8 + $0x10] sm:$0xff]  }
  0x58   :  { %1089 = vmatpush3.bf16.msra.mxu1 %v1192_v55  ;;  %1068 = vmatprep.subr.bf16.mxu0 %v1193_v56  ;;  %v1215_v55 = vld [vmem:[#allocation8 + $0x8] sm:$0xff]   ;;  %v1216_v56 = vld [vmem:[#allocation8] sm:$0xff]  }
  0x59   :  { %1090 = vmatprep.subr.bf16.mxu1 %v1194_v57 }
  0x5b   :  { %1069 = vmatpush3.bf16.msra.mxu0 %v1195_v58 }
  0x5c   :  { %1091 = vmatpush3.bf16.msra.mxu1 %v1196_v59  ;;  %1070 = vmatprep.subr.bf16.mxu0 %v1197_v60 }
  0x5d   :  { %1092 = vmatprep.subr.bf16.mxu1 %v1198_v61 }
  0x5f   :  { %1071 = vmatpush3.bf16.msra.mxu0 %v1199_v62 }
  0x60   :  { %1093 = vmatpush3.bf16.msra.mxu1 %v1200_v63  ;;  %1072 = vmatprep.subr.bf16.mxu0 %v1201_v0 }
  0x61   :  { %1094 = vmatprep.subr.bf16.mxu1 %v1202_v1 }
  0x63   :  { %1073 = vmatpush3.bf16.msra.mxu0 %v1203_v2 }
  0x64   :  { %1095 = vmatpush3.bf16.msra.mxu1 %v1204_v3  ;;  %1074 = vmatprep.subr.bf16.mxu0 %v1205_v4 }
  0x65   :  { %1096 = vmatprep.subr.bf16.mxu1 %v1206_v5 }
  0x67   :  { %1075 = vmatpush3.bf16.msra.mxu0 %v1207_v6 }
  0x68   :  { %1097 = vmatpush3.bf16.msra.mxu1 %v1208_v7  ;;  %1113 = vmatprep.subr.bf16.mxu0 %v1314_v17 }
  0x6a   :  { %740 = vmatmul.mubr.bf16.vlgmr.msra.gmra.mxu0 %v940_v10 }
  0x6b   :  { %781 = vmatmul.mubr.bf16.vlgmr.msra.gmra.mxu1 %v942_v14  ;;  %1114 = vmatpush3.bf16.msra.mxu0 %v1209_v16 }
  0x6c   :  { %1115 = vmatprep.subr.bf16.mxu0 %v1314_v17  ;;  %1129 = vmatprep.mubr.msk.bf16.mxu0 %vm1315_vm0, %v1314_v17 }
  0x6f   :  { %1116 = vmatpush3.bf16.msra.mxu0 %v1210_v18 }
  0x70   :  { %1117 = vmatprep.subr.bf16.mxu0 %v1314_v17 }
  0x73   :  { %1118 = vmatpush3.bf16.msra.mxu0 %v1211_v51 }
  0x74   :  { %1119 = vmatprep.subr.bf16.mxu0 %v1314_v17 }
  0x77   :  { %1120 = vmatpush3.bf16.msra.mxu0 %v1212_v52 }
  0x78   :  { %1121 = vmatprep.subr.bf16.mxu0 %v1314_v17 }
  0x7b   :  { %1122 = vmatpush3.bf16.msra.mxu0 %v1213_v53 }
  0x7c   :  { %1123 = vmatprep.subr.bf16.mxu0 %v1314_v17 }
  0x7f   :  { %1124 = vmatpush3.bf16.msra.mxu0 %v1214_v54 }
  0x80   :  { %1125 = vmatprep.subr.bf16.mxu0 %v1314_v17 }
  0x83   :  { %1126 = vmatpush3.bf16.msra.mxu0 %v1215_v55 }
  0x84   :  { %1127 = vmatprep.subr.bf16.mxu0 %v1314_v17 }
  0x87   :  { %1128 = vmatpush3.bf16.msra.mxu0 %v1216_v56 }
 0x10a   :  { %v1032_v19 = vpop.f32.mrf.mxu0 }
 0x10b   :  { %v1054_v20 = vpop.f32.mrf.mxu1 }
 0x10c   :  { %v1033_v21 = vpop.f32.mrf.mxu0 }
 0x10d   :  { %v1055_v22 = vpop.f32.mrf.mxu1  ;;  %v1034_v26 = vadd.f32 %v1033_v21, %v1032_v19 }
 0x10e   :  { %v1035_v23 = vpop.f32.mrf.mxu0  ;;  %v1056_v27 = vadd.f32 %v1055_v22, %v1054_v20 }
 0x10f   :  { %v1057_v24 = vpop.f32.mrf.mxu1 }
 0x110   :  { %v1036_v25 = vpop.f32.mrf.mxu0  ;;  %v701_v32 = vadd.f32 %v1056_v27, %v1034_v26 }
 0x111   :  { %v1058_v28 = vpop.f32.mrf.mxu1  ;;  %v1037_v33 = vadd.f32 %v1036_v25, %v1035_v23 }
 0x112   :  { %v1059_v34 = vadd.f32 %v1058_v28, %v1057_v24 }
 0x114   :  { %v704_v42 = vadd.f32 %v1059_v34, %v1037_v33 }
 0x12a   :  { %v1076_v29 = vpop.f32.mrf.mxu0 }
 0x12b   :  { %v1098_v30 = vpop.f32.mrf.mxu1 }
 0x12c   :  { %v1077_v31 = vpop.f32.mrf.mxu0 }
 0x12d   :  { %v1078_v35 = vadd.f32 %v1077_v31, %v1076_v29  ;;  %v1099_v36 = vpop.f32.mrf.mxu1 }
 0x12e   :  { %v1079_v37 = vpop.f32.mrf.mxu0  ;;  %v1100_v39 = vadd.f32 %v1099_v36, %v1098_v30 }
 0x12f   :  { %v742_v38 = vadd.f32 %v1078_v35, %v701_v32  ;;  %v1101_v40 = vpop.f32.mrf.mxu1 }
 0x130   :  { %v1080_v41 = vpop.f32.mrf.mxu0 }
 0x131   :  { %v1081_v43 = vadd.f32 %v1080_v41, %v1079_v37  ;;  %v1102_v44 = vpop.f32.mrf.mxu1  ;;  %v783_v45 = vadd.f32 %v1100_v39, %v742_v38 }
 0x132   :  { %v1103_v47 = vadd.f32 %v1102_v44, %v1101_v40 }
 0x133   :  { %v745_v46 = vadd.f32 %v1081_v43, %v704_v42  ;;  %v798_v48 = vmul.f32 %v783_v45, %v783_v45 }
 0x135   :  { %v786_v49 = vadd.f32 %v1103_v47, %v745_v46  ;;  %800 = vadd.xlane.f32.xlu0 %v798_v48 }
 0x137   :  { %v799_v50 = vmul.f32 %v786_v49, %v786_v49 }
 0x139   :  { %802 = vadd.xlane.f32.xlu0 %v799_v50 }
 0x1be   :  { %v801_v57 = vpop.xlane.xlu0 %800 }
 0x1bf   :  { %v804_v58 = vmax.f32 %v801_v57, 1e-12 }
 0x1c1   :  { %1217 = vrsqrt.f32 %v804_v58 }
 0x1c2   :  { %v803_v59 = vpop.xlane.xlu0 %802 }
 0x1c3   :  { %v805_v60 = vmax.f32 %v803_v59, 1e-12 }
 0x1c5   :  { %1219 = vrsqrt.f32 %v805_v60 }
 0x1ce   :  { %v1218_v61 = vpop.eup %1217 }
 0x1cf   :  { %v808_v63 = vmul.f32 %v1218_v61, %v783_v45 }
 0x1d2   :  { %v1220_v62 = vpop.eup %1219 }
 0x1d3   :  { %v809_v0 = vmul.f32 %v1220_v62, %v786_v49 }
 0x1d5   :  { %v810_v1 = vpack.c.bf16 %v809_v0, %v808_v63 }
 0x1d7   :  { %1130 = vmatmul.mubr.bf16.vlgmr.msra.gmra.mxu0 %v810_v1 }
 0x297   :  { %v909_v2 = vpop.f32.mrf.mxu0 }
 0x298   :  { %916 = vst [vmem:[#allocation9] sm:$0xff] %v909_v2 }
 0x299   :  { %v1131_v3 = vpop.f32.mrf.mxu0 }
 0x29b   :  { %v912_v4 = vpop.f32.mrf.mxu0 }
 0x29c   :  { %917 = vst [vmem:[#allocation9 + $0x8] sm:$0xff] %v912_v4 }
 0x29d   :  { %v1132_v5 = vpop.f32.mrf.mxu0 }
 0x29e   :  { %1292 = shalt.err (!%p1289_p5)
}
 0x29f   :  { %s1317_s4 = smov 128   ;;  %s1318_s5 = smov 8  }
 0x2a0   :  { %929 = dma.vmem_to_hbm [thread:$0]  %s924_s2, 256, %s1354_s3, [#allocation5], %s1317_s4, %s1317_s4, %s1318_s5  }
 0x2a1   :  { %1305 = dma.done.wait [#allocation5], 256  }
 0x2a2   :  { %1306 = vsyncadd [#allocation5], 4294967040 }
 0x2a3   :  { %933 = vsyncpa [#allocation4], 1 }
 0x2a4   :  { %934 = vsyncpa [#allocation7], 1 }
 0x2a5   :  { %935 = vsyncpa [#allocation5], 1 }

</bundles_post_ra>
